<compile_context>
chip_gen: v6e
topology: v6e:2x2x1
jax: 0.10.0
libtpu: 0.0.40
codegen_flags: <defaults>
</compile_context>

<pallas_src>
import functools

import jax
import jax.numpy as jnp
from jax.experimental import pallas as pl
from jax.experimental.pallas import tpu as pltpu

LANE = 128       # TPU lane width
MAX_TILE_B = 128 # default batch rows per grid step for large batches


def _round_up(n, m):
    return ((n + m - 1) // m) * m


def _pick_tile_b(B):
    """Batch tile: never pad a tiny batch up to 128 rows; for large batches use bigger
    tiles (amortize ~0.35us/step pipeline overhead) while keeping >= 2 grid steps."""
    b8 = _round_up(B, 8)
    if b8 <= MAX_TILE_B:
        return b8
    for cand in (512, 256, 128):
        if b8 >= 2 * cand:
            return cand
    return MAX_TILE_B


def make_policy_kernel(out_dim):
    """out_dim is the true (unpadded) number of output classes; the padded logit lanes
    already carry -1e30 (baked into b3 at prepare time), so exp() of them is exactly 0."""

    def policy_kernel(x_ref, w1_ref, b1_ref, w2_ref, b2_ref, w3_ref, b3_ref, o_ref):
        # fc1 + relu  (bf16 operands into the MXU, f32 accumulation & elementwise)
        x = x_ref[...]  # already bf16 (cast fused with the pad in the wrapper)
        h1 = jnp.dot(x, w1_ref[...], preferred_element_type=jnp.float32) + b1_ref[...]
        h1 = jnp.maximum(h1, 0.0)

        # fc2 + relu
        h2 = jnp.dot(h1.astype(jnp.bfloat16), w2_ref[...],
                     preferred_element_type=jnp.float32) + b2_ref[...]
        h2 = jnp.maximum(h2, 0.0)

        # output linear (padded lanes get logit == -1e30 from the baked bias mask)
        logits = jnp.dot(h2.astype(jnp.bfloat16), w3_ref[...],
                         preferred_element_type=jnp.float32) + b3_ref[...]

        # numerically-stable softmax over the last dim (matches torch.nn.Softmax(dim=-1));
        # exact divide: the kernel is DMA/overhead-bound, so exact normalization is free.
        m = jnp.max(logits, axis=-1, keepdims=True)
        e = jnp.exp(logits - m)
        s = jnp.sum(e, axis=-1, keepdims=True)
        probs = e / s

        # only the real out_dim lanes are written back (output array is (b_pad, out_dim))
        o_ref[...] = probs[:, :out_dim]

    return policy_kernel


def prepare_params(params):
    """One-time padding / casting of the parameters (outside the per-call forward).

    Returns (padded_params, out_dim). Weights feed the MXU as bf16 (halves their DMA
    bytes); biases stay f32 for the VPU. The softmax mask for padded output lanes is
    baked into b3 as -1e30 (padded w3 columns are zero, so those logits become -1e30)."""
    w1, b1, w2, b2, w3, b3 = params
    in_dim, hidden = w1.shape
    out_dim = w3.shape[1]

    in_pad = _round_up(in_dim, LANE)
    hid_pad = _round_up(hidden, LANE)
    out_pad = _round_up(out_dim, LANE)

    w1p = jnp.pad(w1, ((0, in_pad - in_dim), (0, hid_pad - hidden))).astype(jnp.bfloat16)
    b1p = jnp.pad(b1, ((0, 0), (0, hid_pad - hidden)))
    w2p = jnp.pad(w2, ((0, hid_pad - hidden), (0, hid_pad - hidden))).astype(jnp.bfloat16)
    b2p = jnp.pad(b2, ((0, 0), (0, hid_pad - hidden)))
    w3p = jnp.pad(w3, ((0, hid_pad - hidden), (0, out_pad - out_dim))).astype(jnp.bfloat16)
    # large finite negative (not -inf) to avoid any inf-inf NaN risk
    b3p = jnp.pad(b3, ((0, 0), (0, out_pad - out_dim)), constant_values=-1e30)

    return (w1p, b1p, w2p, b2p, w3p, b3p), out_dim


@functools.partial(jax.jit, static_argnames=("out_dim",))
def policy_network_forward(x, prepared, out_dim):
    w1p, b1p, w2p, b2p, w3p, b3p = prepared
    B, in_dim = x.shape
    in_pad = w1p.shape[0]

    tile_b = _pick_tile_b(B)
    b_pad = _round_up(B, tile_b)

    # pad batch/feature dims and cast to bf16 in one pass (halves input HBM bytes)
    xp = jnp.pad(x, ((0, b_pad - B), (0, in_pad - in_dim))).astype(jnp.bfloat16)

    grid = (b_pad // tile_b,)

    def resident(shape):
        # constant block index -> operand is DMA'd once and stays resident in VMEM
        return pl.BlockSpec(shape, lambda i: (0, 0))

    out = pl.pallas_call(
        make_policy_kernel(out_dim),
        out_shape=jax.ShapeDtypeStruct((b_pad, out_dim), jnp.float32),
        grid=grid,
        in_specs=[
            pl.BlockSpec((tile_b, in_pad), lambda i: (i, 0)),   # x: tiled over batch
            resident(w1p.shape), resident(b1p.shape),
            resident(w2p.shape), resident(b2p.shape),
            resident(w3p.shape), resident(b3p.shape),
        ],
        # block last dim == full array last dim (out_dim), so the (8,128) rule is satisfied
        out_specs=pl.BlockSpec((tile_b, out_dim), lambda i: (i, 0)),
        compiler_params=pltpu.CompilerParams(
            dimension_semantics=("parallel",),   # batch steps independent (v7x dual-TC)
        ),
    )(xp, w1p, b1p, w2p, b2p, w3p, b3p)

    return out[:B]


def init_params(key, input_dim, output_dim, hidden=64):
    """Deterministic init mimicking torch.nn.Linear default (U[-1/sqrt(fan_in), 1/sqrt(fan_in)])."""
    keys = jax.random.split(key, 6)

    def linear(kw, kb, fan_in, fan_out):
        bound = 1.0 / jnp.sqrt(jnp.float32(fan_in))
        w = jax.random.uniform(kw, (fan_in, fan_out), jnp.float32, -bound, bound)
        b = jax.random.uniform(kb, (1, fan_out), jnp.float32, -bound, bound)
        return w, b

    w1, b1 = linear(keys[0], keys[1], input_dim, hidden)
    w2, b2 = linear(keys[2], keys[3], hidden, hidden)
    w3, b3 = linear(keys[4], keys[5], hidden, output_dim)
    return (w1, b1, w2, b2, w3, b3)


def reference_forward(x, params):
    w1, b1, w2, b2, w3, b3 = params
    h1 = jnp.maximum(x @ w1 + b1, 0.0)
    h2 = jnp.maximum(h1 @ w2 + b2, 0.0)
    return jax.nn.softmax(h2 @ w3 + b3, axis=-1)


if __name__ == "__main__":
    key = jax.random.PRNGKey(0)
    k_x, k_p = jax.random.split(key)

    # small, REINFORCE-style policy shapes (e.g. CartPole: 4 observations -> 2 actions)
    batch, input_dim, output_dim = 8, 4, 2
    x = jax.random.normal(k_x, (batch, input_dim), jnp.float32)
    params = init_params(k_p, input_dim, output_dim)

    prepared, out_dim = prepare_params(params)   # one-time pad/cast (outside the forward)

    out = policy_network_forward(x, prepared, out_dim)
    out = jax.block_until_ready(out)

    # sanity: shape, rows of a softmax sum to ~1 (exact divide now), and agreement with a
    # pure-JAX f32 reference (loose tolerance: MXU operands are bf16)
    assert out.shape == (batch, output_dim)
    assert jnp.allclose(jnp.sum(out, axis=-1), 1.0, atol=1e-5)
    ref = reference_forward(x, params)
    assert jnp.allclose(out, ref, atol=3e-2)

    print("KERNEL_OK")
</pallas_src>

<mosaic_0001>
module attributes {stable_mosaic.version = 11 : i64} {
  func.func @policy_kernel(%arg0: i32, %arg1: memref<8x128xbf16, #tpu.memory_space<vmem>>, %arg2: memref<128x128xbf16, #tpu.memory_space<vmem>>, %arg3: memref<1x128xf32, #tpu.memory_space<vmem>>, %arg4: memref<128x128xbf16, #tpu.memory_space<vmem>>, %arg5: memref<1x128xf32, #tpu.memory_space<vmem>>, %arg6: memref<128x128xbf16, #tpu.memory_space<vmem>>, %arg7: memref<1x128xf32, #tpu.memory_space<vmem>>, %arg8: memref<8x2xf32, #tpu.memory_space<vmem>>) attributes {dimension_semantics = [#tpu.dimension_semantics<parallel>], iteration_bounds = array<i64: 1>, scalar_prefetch = 0 : i64, scratch_operands = 0 : i64, tpu.core_type = #tpu.core_type<tc>, window_params = [{transform_indices = @transform_0, window_bounds = array<i64: 8, 128>}, {pipeline_mode = #tpu.pipeline_mode<synchronous>, transform_indices = @transform_1, window_bounds = array<i64: 128, 128>}, {pipeline_mode = #tpu.pipeline_mode<synchronous>, transform_indices = @transform_2, window_bounds = array<i64: 1, 128>}, {pipeline_mode = #tpu.pipeline_mode<synchronous>, transform_indices = @transform_3, window_bounds = array<i64: 128, 128>}, {pipeline_mode = #tpu.pipeline_mode<synchronous>, transform_indices = @transform_4, window_bounds = array<i64: 1, 128>}, {pipeline_mode = #tpu.pipeline_mode<synchronous>, transform_indices = @transform_5, window_bounds = array<i64: 128, 128>}, {pipeline_mode = #tpu.pipeline_mode<synchronous>, transform_indices = @transform_6, window_bounds = array<i64: 1, 128>}, {transform_indices = @transform_7, window_bounds = array<i64: 8, 2>}]} {
    %c0 = arith.constant 0 : index
    %c0_0 = arith.constant 0 : index
    %0 = vector.load %arg1[%c0, %c0_0] : memref<8x128xbf16, #tpu.memory_space<vmem>>, vector<8x128xbf16>
    %c0_1 = arith.constant 0 : index
    %c0_2 = arith.constant 0 : index
    %1 = vector.load %arg2[%c0_1, %c0_2] : memref<128x128xbf16, #tpu.memory_space<vmem>>, vector<128x128xbf16>
    %cst = arith.constant dense<0.000000e+00> : vector<8x128xf32>
    %2 = tpu.matmul %0, %1, %cst {dimension_numbers = #tpu.dot_dimension_numbers<[1], [0], [0], [1], [0, 0, 1, 1], [], []>} : vector<8x128xbf16>, vector<128x128xbf16>, vector<8x128xf32> -> vector<8x128xf32>
    %c0_3 = arith.constant 0 : index
    %c0_4 = arith.constant 0 : index
    %3 = vector.load %arg3[%c0_3, %c0_4] : memref<1x128xf32, #tpu.memory_space<vmem>>, vector<1x128xf32>
    %4 = vector.broadcast %3 : vector<1x128xf32> to vector<8x128xf32>
    %5 = arith.addf %2, %4 : vector<8x128xf32>
    %cst_5 = arith.constant 0.000000e+00 : f32
    %6 = vector.broadcast %cst_5 : f32 to vector<8x128xf32>
    %7 = arith.maximumf %5, %6 : vector<8x128xf32>
    %8 = arith.truncf %7 : vector<8x128xf32> to vector<8x128xbf16>
    %c0_6 = arith.constant 0 : index
    %c0_7 = arith.constant 0 : index
    %9 = vector.load %arg4[%c0_6, %c0_7] : memref<128x128xbf16, #tpu.memory_space<vmem>>, vector<128x128xbf16>
    %cst_8 = arith.constant dense<0.000000e+00> : vector<8x128xf32>
    %10 = tpu.matmul %8, %9, %cst_8 {dimension_numbers = #tpu.dot_dimension_numbers<[1], [0], [0], [1], [0, 0, 1, 1], [], []>} : vector<8x128xbf16>, vector<128x128xbf16>, vector<8x128xf32> -> vector<8x128xf32>
    %c0_9 = arith.constant 0 : index
    %c0_10 = arith.constant 0 : index
    %11 = vector.load %arg5[%c0_9, %c0_10] : memref<1x128xf32, #tpu.memory_space<vmem>>, vector<1x128xf32>
    %12 = vector.broadcast %11 : vector<1x128xf32> to vector<8x128xf32>
    %13 = arith.addf %10, %12 : vector<8x128xf32>
    %cst_11 = arith.constant 0.000000e+00 : f32
    %14 = vector.broadcast %cst_11 : f32 to vector<8x128xf32>
    %15 = arith.maximumf %13, %14 : vector<8x128xf32>
    %16 = arith.truncf %15 : vector<8x128xf32> to vector<8x128xbf16>
    %c0_12 = arith.constant 0 : index
    %c0_13 = arith.constant 0 : index
    %17 = vector.load %arg6[%c0_12, %c0_13] : memref<128x128xbf16, #tpu.memory_space<vmem>>, vector<128x128xbf16>
    %cst_14 = arith.constant dense<0.000000e+00> : vector<8x128xf32>
    %18 = tpu.matmul %16, %17, %cst_14 {dimension_numbers = #tpu.dot_dimension_numbers<[1], [0], [0], [1], [0, 0, 1, 1], [], []>} : vector<8x128xbf16>, vector<128x128xbf16>, vector<8x128xf32> -> vector<8x128xf32>
    %c0_15 = arith.constant 0 : index
    %c0_16 = arith.constant 0 : index
    %19 = vector.load %arg7[%c0_15, %c0_16] : memref<1x128xf32, #tpu.memory_space<vmem>>, vector<1x128xf32>
    %20 = vector.broadcast %19 : vector<1x128xf32> to vector<8x128xf32>
    %21 = arith.addf %18, %20 : vector<8x128xf32>
    %cst_17 = arith.constant dense<0xFF800000> : vector<8xf32>
    %22 = vector.multi_reduction <maximumf>, %21, %cst_17 [1] : vector<8x128xf32> to vector<8xf32>
    %23 = vector.shape_cast %22 : vector<8xf32> to vector<8x1xf32>
    %24 = vector.broadcast %23 : vector<8x1xf32> to vector<8x128xf32>
    %25 = arith.subf %21, %24 : vector<8x128xf32>
    %26 = math.exp %25 : vector<8x128xf32>
    %cst_18 = arith.constant dense<0.000000e+00> : vector<8xf32>
    %27 = vector.multi_reduction <add>, %26, %cst_18 [1] : vector<8x128xf32> to vector<8xf32>
    %28 = vector.shape_cast %27 : vector<8xf32> to vector<8x1xf32>
    %29 = vector.broadcast %28 : vector<8x1xf32> to vector<8x128xf32>
    %30 = arith.divf %26, %29 : vector<8x128xf32>
    %31 = vector.extract_strided_slice %30 {offsets = [0, 0], sizes = [8, 2], strides = [1, 1]} : vector<8x128xf32> to vector<8x2xf32>
    %c0_19 = arith.constant 0 : index
    %c0_20 = arith.constant 0 : index
    %32 = vector.load %arg8[%c0_19, %c0_20] : memref<8x2xf32, #tpu.memory_space<vmem>>, vector<8x2xf32>
    tpu.vector_store %arg8[%c0_19, %c0_20], %31 {strides = array<i32>} : memref<8x2xf32, #tpu.memory_space<vmem>>, vector<8x2xf32>,
    return
  }
  func.func @transform_0(%arg0: i32) -> (i32, i32) {
    %c0_i32 = arith.constant 0 : i32
    %c0_i32_0 = arith.constant 0 : i32
    return %arg0, %c0_i32 : i32, i32
  }
  func.func @transform_1(%arg0: i32) -> (i32, i32) {
    %c0_i32 = arith.constant 0 : i32
    %c0_i32_0 = arith.constant 0 : i32
    %c0_i32_1 = arith.constant 0 : i32
    return %c0_i32, %c0_i32_0 : i32, i32
  }
  func.func @transform_2(%arg0: i32) -> (i32, i32) {
    %c0_i32 = arith.constant 0 : i32
    %c0_i32_0 = arith.constant 0 : i32
    %c0_i32_1 = arith.constant 0 : i32
    return %c0_i32, %c0_i32_0 : i32, i32
  }
  func.func @transform_3(%arg0: i32) -> (i32, i32) {
    %c0_i32 = arith.constant 0 : i32
    %c0_i32_0 = arith.constant 0 : i32
    %c0_i32_1 = arith.constant 0 : i32
    return %c0_i32, %c0_i32_0 : i32, i32
  }
  func.func @transform_4(%arg0: i32) -> (i32, i32) {
    %c0_i32 = arith.constant 0 : i32
    %c0_i32_0 = arith.constant 0 : i32
    %c0_i32_1 = arith.constant 0 : i32
    return %c0_i32, %c0_i32_0 : i32, i32
  }
  func.func @transform_5(%arg0: i32) -> (i32, i32) {
    %c0_i32 = arith.constant 0 : i32
    %c0_i32_0 = arith.constant 0 : i32
    %c0_i32_1 = arith.constant 0 : i32
    return %c0_i32, %c0_i32_0 : i32, i32
  }
  func.func @transform_6(%arg0: i32) -> (i32, i32) {
    %c0_i32 = arith.constant 0 : i32
    %c0_i32_0 = arith.constant 0 : i32
    %c0_i32_1 = arith.constant 0 : i32
    return %c0_i32, %c0_i32_0 : i32, i32
  }
  func.func @transform_7(%arg0: i32) -> (i32, i32) {
    %c0_i32 = arith.constant 0 : i32
    %c0_i32_0 = arith.constant 0 : i32
    return %arg0, %c0_i32 : i32, i32
  }
}

</mosaic_0001>

<bundles_post_ra>
// kernel: policy_network_forward.1
= control target key start
LH: loop header
LB: loop body
LE: loop exit
PB: predicated region body
PF: predicated region fallthrough
CT: control target
= control target key end

     0   :  { %12 = vsyncpa [#allocation3], 0  ;;  %s737_s0 = inlined_call_operand.vmem [shape: bf16[8,128], index: 0, kind: input, shape index: {}]   ;;  %s738_s1 = inlined_call_operand.hbm [shape: bf16[128,128], index: 1, kind: input, shape index: {}]   ;;  %s739_s2 = inlined_call_operand.vmem [shape: f32[1,128], index: 2, kind: input, shape index: {}]   ;;  %s740_s3 = inlined_call_operand.hbm [shape: bf16[128,128], index: 3, kind: input, shape index: {}]   ;;  %s741_s4 = inlined_call_operand.vmem [shape: f32[1,128], index: 4, kind: input, shape index: {}]   ;;  %s742_s5 = inlined_call_operand.hbm [shape: bf16[128,128], index: 5, kind: input, shape index: {}]   ;;  %s743_s6 = inlined_call_operand.vmem [shape: f32[1,128], index: 6, kind: input, shape index: {}]   ;;  %s744_s7 = inlined_call_operand.vmem [shape: f32[8,2], index: 7, kind: output, shape index: {}]  }
   0x1   :  { %13 = vsyncpa [#allocation5], 0  ;;  %s636_s24 = smov [#allocation4]   ;;  %s637_s26 = smov [#allocation2]  }
   0x2   :  { %s35_s25 = sshll.u32 %s636_s24, 4  ;;  %s21_s27 = sshll.u32 %s637_s26, 4  ;;  %s36_s25 = int_to_ptr.vmem [resolvable:$true] %s35_s25  ;;  %s22_s27 = int_to_ptr.vmem [resolvable:$true] %s21_s27 }
   0x3   :  { %s580_s28 = scalar_lea.vmem %s36_s25, 1024  ;;  %p585_p1 = scmp.lt.s32.totalorder %s36_s25, %s36_s25 }
   0x4   :  { %p581_p0 = scmp.ne.s32.totalorder %s36_s25, %s580_s28  ;;  %p586_p2 = scmp.lt.s32.totalorder %s580_s28, %s580_s28 }
   0x6   :  { %p587_p3 = por %p586_p2, %p585_p1 }
   0x8   :  { %p588_p4 = pnand %p587_p3, %p581_p0 }
   0xa   :  { %591 = shalt.err (!%p588_p4)
}
   0xb   :  { %s638_s29 = smov 64   ;;  %s639_s30 = smov 4  }
   0xc   :  { %41 = dma.hbm_to_vmem [thread:$0]  %s740_s3, 1024, %s36_s25, [#allocation5], %s638_s29, %s638_s29, %s639_s30  }
   0xd   :  { %s600_s10 = scalar_lea.vmem %s22_s27, 1024  ;;  %p605_p6 = scmp.lt.s32.totalorder %s22_s27, %s22_s27 }
   0xe   :  { %p601_p5 = scmp.ne.s32.totalorder %s22_s27, %s600_s10  ;;  %p606_p7 = scmp.lt.s32.totalorder %s600_s10, %s600_s10 }
  0x10   :  { %p607_p8 = por %p606_p7, %p605_p6 }
  0x12   :  { %p608_p9 = pnand %p607_p8, %p601_p5 }
  0x14   :  { %611 = shalt.err (!%p608_p9)
}
  0x15   :  { %27 = dma.hbm_to_vmem [thread:$0]  %s738_s1, 1024, %s22_s27, [#allocation3], %s638_s29, %s638_s29, %s639_s30  }
  0x16   :  { %s640_s13 = smov [#allocation6]  }
  0x17   :  { %s49_s14 = sshll.u32 %s640_s13, 4  ;;  %s50_s14 = int_to_ptr.vmem [resolvable:$true] %s49_s14 }
  0x18   :  { %s620_s15 = scalar_lea.vmem %s50_s14, 1024  ;;  %p625_p11 = scmp.lt.s32.totalorder %s50_s14, %s50_s14 }
  0x19   :  { %p621_p10 = scmp.ne.s32.totalorder %s50_s14, %s620_s15  ;;  %p626_p12 = scmp.lt.s32.totalorder %s620_s15, %s620_s15 }
  0x1b   :  { %p627_p13 = por %p626_p12, %p625_p11 }
  0x1d   :  { %p628_p0 = pnand %p627_p13, %p621_p10 }
  0x1f   :  { %631 = shalt.err (!%p628_p0)
}
  0x20   :  { %55 = dma.hbm_to_vmem [thread:$0]  %s742_s5, 1024, %s50_s14, [#allocation5], %s638_s29, %s638_s29, %s639_s30  }
  0x21   :  { %632 = dma.done.wait [#allocation3], 1024  }
  0x22   :  { %633 = vsyncadd [#allocation3], 4294966272 }
  0x23   :  { %634 = dma.done.wait [#allocation5], 2048  }
  0x24   :  { %635 = vsyncadd [#allocation5], 4294965248  ;;  %v641_v0 = vmov 0.0   ;;  %vm642_vm0 = vmmov 0   ;;  %v544_v1 = vld [vmem:[#allocation2 + $0x38] sm:$0xff]   ;;  %v545_v2 = vld [vmem:[#allocation2 + $0x30] sm:$0xff]  }
  0x25   :  { %477 = vmatprep.subr.bf16.mxu0 %v641_v0  ;;  %493 = vmatprep.mubr.msk.bf16.mxu0 %vm642_vm0, %v641_v0  ;;  %v546_v3 = vld [vmem:[#allocation2 + $0x28] sm:$0xff]   ;;  %v552_v4 = vld [vmem:[#allocation4 + $0x38] sm:$0xff]   ;;  %v547_v5 = vld [vmem:[#allocation2 + $0x20] sm:$0xff]   ;;  %vm415_vm1 = vcmask 15360  }
  0x26   :  { %497 = vmatprep.subr.bf16.mxu1 %v641_v0  ;;  %513 = vmatprep.mubr.msk.bf16.mxu1 %vm642_vm0, %v641_v0  ;;  %v553_v6 = vld [vmem:[#allocation4 + $0x30] sm:$0xff]   ;;  %v548_v7 = vld [vmem:[#allocation2 + $0x18] sm:$0xff]   ;;  %v554_v8 = vld [vmem:[#allocation4 + $0x28] sm:$0xff]  }
  0x27   :  { %478 = vmatpush3.bf16.msra.mxu0 %v544_v1  ;;  %498 = vmatpush3.bf16.msra.mxu1 %v552_v4  ;;  %v549_v9 = vld [vmem:[#allocation2 + $0x10] sm:$0xff]   ;;  %v555_v10 = vld [vmem:[#allocation4 + $0x20] sm:$0xff]   ;;  %v550_v11 = vld [vmem:[#allocation2 + $0x8] sm:$0xff]  }
  0x28   :  { %479 = vmatprep.subr.bf16.mxu0 %v641_v0  ;;  %499 = vmatprep.subr.bf16.mxu1 %v641_v0  ;;  %v556_v12 = vld [vmem:[#allocation4 + $0x18] sm:$0xff]   ;;  %v551_v13 = vld [vmem:[#allocation2] sm:$0xff]   ;;  %v557_v14 = vld [vmem:[#allocation4 + $0x10] sm:$0xff]  }
  0x29   :  { %v68_v15 = vld [vmem:[%s737_s0] sm:$0xf]  ;;  %v558_v16 = vld [vmem:[#allocation4 + $0x8] sm:$0xff]   ;;  %v560_v18 = vld [vmem:[#allocation6 + $0x38] sm:$0xff]  }
  0x2a   :  { %v559_v17 = vld [vmem:[#allocation4] sm:$0xff]   ;;  %v561_v19 = vld [vmem:[#allocation6 + $0x30] sm:$0xff]   ;;  %v562_v20 = vld [vmem:[#allocation6 + $0x28] sm:$0xff]  }
  0x2b   :  { %480 = vmatpush3.bf16.msra.mxu0 %v545_v2  ;;  %500 = vmatpush3.bf16.msra.mxu1 %v553_v6  ;;  %v563_v21 = vld [vmem:[#allocation6 + $0x20] sm:$0xff]   ;;  %v564_v22 = vld [vmem:[#allocation6 + $0x18] sm:$0xff]   ;;  %v565_v23 = vld [vmem:[#allocation6 + $0x10] sm:$0xff]  }
  0x2c   :  { %481 = vmatprep.subr.bf16.mxu0 %v641_v0  ;;  %501 = vmatprep.subr.bf16.mxu1 %v641_v0  ;;  %v423_v24 = vld [vmem:[%s739_s2] ss:$0 sm:$0xff]  ;;  %v566_v32 = vld [vmem:[#allocation6 + $0x8] sm:$0xff]  }
  0x2d   :  { %v567_v33 = vld [vmem:[#allocation6] sm:$0xff]  }
  0x2e   :  { %v432_v34 = vld [vmem:[%s741_s4] ss:$0 sm:$0xff] }
  0x2f   :  { %482 = vmatpush3.bf16.msra.mxu0 %v546_v3  ;;  %502 = vmatpush3.bf16.msra.mxu1 %v554_v8  ;;  %v441_v42 = vld [vmem:[%s743_s6] ss:$0 sm:$0xff] }
  0x30   :  { %483 = vmatprep.subr.bf16.mxu0 %v641_v0  ;;  %503 = vmatprep.subr.bf16.mxu1 %v641_v0 }
  0x33   :  { %484 = vmatpush3.bf16.msra.mxu0 %v547_v5  ;;  %504 = vmatpush3.bf16.msra.mxu1 %v555_v10 }
  0x34   :  { %485 = vmatprep.subr.bf16.mxu0 %v641_v0  ;;  %505 = vmatprep.subr.bf16.mxu1 %v641_v0 }
  0x37   :  { %486 = vmatpush3.bf16.msra.mxu0 %v548_v7  ;;  %506 = vmatpush3.bf16.msra.mxu1 %v556_v12 }
  0x38   :  { %487 = vmatprep.subr.bf16.mxu0 %v641_v0  ;;  %507 = vmatprep.subr.bf16.mxu1 %v641_v0 }
  0x3b   :  { %488 = vmatpush3.bf16.msra.mxu0 %v549_v9  ;;  %508 = vmatpush3.bf16.msra.mxu1 %v557_v14 }
  0x3c   :  { %489 = vmatprep.subr.bf16.mxu0 %v641_v0  ;;  %509 = vmatprep.subr.bf16.mxu1 %v641_v0 }
  0x3f   :  { %490 = vmatpush3.bf16.msra.mxu0 %v550_v11  ;;  %510 = vmatpush3.bf16.msra.mxu1 %v558_v16 }
  0x40   :  { %491 = vmatprep.subr.bf16.mxu0 %v641_v0  ;;  %511 = vmatprep.subr.bf16.mxu1 %v641_v0 }
  0x43   :  { %492 = vmatpush3.bf16.msra.mxu0 %v551_v13  ;;  %512 = vmatpush3.bf16.msra.mxu1 %v559_v17 }
  0x44   :  { %517 = vmatprep.subr.bf16.mxu0 %v641_v0 }
  0x46   :  { %494 = vmatmul.mubr.bf16.vlgmr.msra.gmra.mxu0 %v68_v15 }
  0x47   :  { %533 = vmatprep.mubr.msk.bf16.mxu0 %vm642_vm0, %v641_v0  ;;  %518 = vmatpush3.bf16.msra.mxu0 %v560_v18 }
  0x48   :  { %519 = vmatprep.subr.bf16.mxu0 %v641_v0 }
  0x4b   :  { %520 = vmatpush3.bf16.msra.mxu0 %v561_v19 }
  0x4c   :  { %521 = vmatprep.subr.bf16.mxu0 %v641_v0 }
  0x4f   :  { %522 = vmatpush3.bf16.msra.mxu0 %v562_v20 }
  0x50   :  { %523 = vmatprep.subr.bf16.mxu0 %v641_v0 }
  0x53   :  { %524 = vmatpush3.bf16.msra.mxu0 %v563_v21 }
  0x54   :  { %525 = vmatprep.subr.bf16.mxu0 %v641_v0 }
  0x57   :  { %526 = vmatpush3.bf16.msra.mxu0 %v564_v22 }
  0x58   :  { %527 = vmatprep.subr.bf16.mxu0 %v641_v0 }
  0x5b   :  { %528 = vmatpush3.bf16.msra.mxu0 %v565_v23 }
  0x5c   :  { %529 = vmatprep.subr.bf16.mxu0 %v641_v0 }
  0x5f   :  { %530 = vmatpush3.bf16.msra.mxu0 %v566_v32 }
  0x60   :  { %531 = vmatprep.subr.bf16.mxu0 %v641_v0 }
  0x63   :  { %532 = vmatpush3.bf16.msra.mxu0 %v567_v33 }
 0x106   :  { %v174_v25 = vpop.f32.mrf.mxu0 }
 0x107   :  { %v175_v26 = vadd.f32 %v423_v24, %v174_v25 }
 0x108   :  { %v495_v27 = vpop.f32.mrf.mxu0 }
 0x109   :  { %v180_v28 = vmax.f32 %v175_v26, 0.0 }
 0x10a   :  { %v177_v29 = vpop.f32.mrf.mxu0 }
 0x10b   :  { %v181_v30 = vpack.c.bf16 %v180_v28, %v180_v28 }
 0x10c   :  { %v496_v31 = vpop.f32.mrf.mxu0 }
 0x10d   :  { %514 = vmatmul.mubr.bf16.vlgmr.msra.gmra.mxu1 %v181_v30 }
 0x1cd   :  { %v287_v35 = vpop.f32.mrf.mxu1 }
 0x1ce   :  { %v288_v36 = vadd.f32 %v432_v34, %v287_v35 }
 0x1cf   :  { %v515_v37 = vpop.f32.mrf.mxu1 }
 0x1d0   :  { %v293_v38 = vmax.f32 %v288_v36, 0.0 }
 0x1d1   :  { %v290_v39 = vpop.f32.mrf.mxu1 }
 0x1d2   :  { %v294_v40 = vpack.c.bf16 %v293_v38, %v293_v38 }
 0x1d3   :  { %v516_v41 = vpop.f32.mrf.mxu1 }
 0x1d4   :  { %534 = vmatmul.mubr.bf16.vlgmr.msra.gmra.mxu0 %v294_v40 }
 0x294   :  { %v400_v43 = vpop.f32.mrf.mxu0 }
 0x295   :  { %v401_v44 = vadd.f32 %v441_v42, %v400_v43 }
 0x296   :  { %v535_v45 = vpop.f32.mrf.mxu0 }
 0x297   :  { %406 = vmax.xlane.f32.xlu0 %v401_v44 }
 0x298   :  { %v403_v46 = vpop.f32.mrf.mxu0 }
 0x29a   :  { %v536_v47 = vpop.f32.mrf.mxu0 }
 0x320   :  { %v407_v48 = vpop.xlane.xlu0 %406 }
 0x321   :  { %v408_v49 = vsub.f32 %v401_v44, %v407_v48 }
 0x323   :  { %v409_v50 = vmul.f32 1.442695, %v408_v49 }
 0x325   :  { %568 = vpow2.f32 %v409_v50 }
 0x332   :  { %v569_v51 = vpop.eup %568 }
 0x333   :  { %411 = vadd.xlane.f32.xlu0 %v569_v51 }
 0x3bc   :  { %v412_v52 = vpop.xlane.xlu0 %411 }
 0x3bd   :  { %570 = vrcp.f32 %v412_v52 }
 0x3ca   :  { %v571_v53 = vpop.eup %570 }
 0x3cb   :  { %v414_v54 = vmul.f32 %v571_v53, %v569_v51 }
 0x3cd   :  { %416 = vst.msk [vmem:[%s744_s7] sm:$0xff] %vm415_vm1, %v414_v54 }
 0x3ce   :  { %421 = vsyncpa [#allocation3], 1 }
 0x3cf   :  { %422 = vsyncpa [#allocation5], 1 }

</bundles_post_ra>
